<compile_context>
chip_gen: v6e
topology: v6e:2x2x1
jax: 0.10.0
libtpu: 0.0.40
codegen_flags: <defaults>
</compile_context>

<pallas_src>
import jax
import jax.numpy as jnp
from jax.experimental import pallas as pl
from jax.experimental.pallas import tpu as pltpu

EPS = 1e-5
NEG_SLOPE = 0.2
KH = KW = 4
LANE = 128
SUBLANE = 8


def _round_up(x, m):
    return (x + m - 1) // m * m


def _vmem_limit_bytes(block_bytes):
    # double-buffering of every block + slack, clamped to the v7x physical budget.
    est = 2 * block_bytes + (2 << 20)
    return int(min(max(est, 4 << 20), 64 << 20))


# ----------------------------- Pallas kernels -----------------------------

def conv_stats_kernel(p_ref, w_ref, y_ref, stats_ref):
    # p: (TM, TK) bf16   w: (TK, Cp) bf16   y: (TM, Cp) f32   stats: (8, Cp) f32
    k = pl.program_id(1)
    prod = jnp.dot(p_ref[...], w_ref[...], preferred_element_type=jnp.float32)

    @pl.when(k == 0)
    def _():
        y_ref[...] = prod

    @pl.when(k != 0)
    def _():
        y_ref[...] += prod

    @pl.when(k == pl.num_programs(1) - 1)
    def _():
        # Per-tile partial BatchNorm statistics (one-pass sum / sum-of-squares).
        y = y_ref[...]
        s = jnp.sum(y, axis=0, keepdims=True)          # (1, Cp)
        ss = jnp.sum(y * y, axis=0, keepdims=True)     # (1, Cp)
        row = jax.lax.broadcasted_iota(jnp.int32, stats_ref.shape, 0)
        stats_ref[...] = jnp.where(row == 0, s, jnp.where(row == 1, ss, 0.0))


def bn_lrelu_kernel(y_ref, scale_ref, shift_ref, o_ref):
    # y: (TM, Cp) f32   scale/shift: (1, Cp) f32   o: (TM, Cp) f32 (aliased with y)
    z = y_ref[...] * scale_ref[...] + shift_ref[...]
    o_ref[...] = jnp.where(z > 0, z, NEG_SLOPE * z)


# ----------------------------- wrapper -----------------------------

def cnn_block_pallas(x_nchw, w_oihw, gamma, beta, stride):
    N, Cin, H, W = x_nchw.shape
    Cout = w_oihw.shape[0]
    OH = (H + 2 - KH) // stride + 1
    OW = (W + 2 - KW) // stride + 1
    M = N * OH * OW
    K = KH * KW * Cin

    # --- JAX glue: reflect pad (pad=1), NCHW->NHWC, im2col in bf16 ---
    x_nhwc = jnp.transpose(x_nchw, (0, 2, 3, 1))
    xp = jnp.pad(x_nhwc, ((0, 0), (1, 1), (1, 1), (0, 0)), mode="reflect")
    cols = []
    for kh in range(KH):
        for kw in range(KW):
            cols.append(
                xp[:, kh:kh + stride * (OH - 1) + 1:stride,
                      kw:kw + stride * (OW - 1) + 1:stride, :]
            )
    # K index order = (kh, kw, cin), matching the weight permutation below.
    patches = jnp.concatenate(cols, axis=-1).reshape(M, K).astype(jnp.bfloat16)

    # PyTorch weight (Cout, Cin, KH, KW) -> (KH, KW, Cin, Cout) -> (K, Cout)
    w_mat = jnp.transpose(w_oihw, (2, 3, 1, 0)).reshape(K, Cout).astype(jnp.bfloat16)

    # --- pad to lane/sublane-friendly shapes (zero padding is numerically exact) ---
    Cp = _round_up(Cout, LANE)
    if K >= 512:
        TK = 512
        Kp = _round_up(K, TK)
    else:
        Kp = _round_up(K, LANE)
        TK = Kp
    kt = Kp // TK

    TM = 512 if M >= 512 else _round_up(M, SUBLANE)
    Mp = _round_up(M, TM)
    nt = Mp // TM

    patches_p = jnp.pad(patches, ((0, Mp - M), (0, Kp - K)))
    w_p = jnp.pad(w_mat, ((0, Kp - K), (0, Cp - Cout)))

    # --- phase 1: conv matmul (K accumulated into resident out block) + BN partial stats ---
    blocks_a = TM * TK * 2 + TK * Cp * 2 + TM * Cp * 4 + SUBLANE * Cp * 4
    y_full, stats = pl.pallas_call(
        conv_stats_kernel,
        out_shape=(
            jax.ShapeDtypeStruct((Mp, Cp), jnp.float32),
            jax.ShapeDtypeStruct((nt * SUBLANE, Cp), jnp.float32),
        ),
        grid=(nt, kt),
        in_specs=[
            pl.BlockSpec((TM, TK), lambda i, k: (i, k)),
            pl.BlockSpec((TK, Cp), lambda i, k: (k, 0)),
        ],
        out_specs=(
            pl.BlockSpec((TM, Cp), lambda i, k: (i, 0)),
            pl.BlockSpec((SUBLANE, Cp), lambda i, k: (i, 0)),
        ),
        compiler_params=pltpu.CompilerParams(
            dimension_semantics=("parallel", "arbitrary"),
            vmem_limit_bytes=_vmem_limit_bytes(blocks_a),
        ),
    )(patches_p, w_p)

    # --- tiny JAX glue: global BN statistics (biased variance, eps=1e-5) ---
    st = stats.reshape(nt, SUBLANE, Cp)
    total = jnp.sum(st[:, 0, :], axis=0)
    total_sq = jnp.sum(st[:, 1, :], axis=0)
    inv_m = 1.0 / float(M)                      # true M (zero-padded rows contribute 0)
    mean = total * inv_m
    var = jnp.maximum(total_sq * inv_m - mean * mean, 0.0)
    gamma_p = jnp.pad(gamma.astype(jnp.float32), (0, Cp - Cout))
    beta_p = jnp.pad(beta.astype(jnp.float32), (0, Cp - Cout))
    scale_v = gamma_p * jax.lax.rsqrt(var + EPS)
    shift_v = beta_p - mean * scale_v
    scale = scale_v.reshape(1, Cp)
    shift = shift_v.reshape(1, Cp)

    # --- phase 2: normalize (single FMA) + LeakyReLU(0.2), in place over the staging buf ---
    blocks_b = 2 * TM * Cp * 4 + 2 * Cp * 4
    out_p = pl.pallas_call(
        bn_lrelu_kernel,
        out_shape=jax.ShapeDtypeStruct((Mp, Cp), jnp.float32),
        grid=(nt,),
        in_specs=[
            pl.BlockSpec((TM, Cp), lambda i: (i, 0)),
            pl.BlockSpec((1, Cp), lambda i: (0, 0)),
            pl.BlockSpec((1, Cp), lambda i: (0, 0)),
        ],
        out_specs=pl.BlockSpec((TM, Cp), lambda i: (i, 0)),
        input_output_aliases={0: 0},
        compiler_params=pltpu.CompilerParams(
            dimension_semantics=("parallel",),
            vmem_limit_bytes=_vmem_limit_bytes(blocks_b),
        ),
    )(y_full, scale, shift)

    # rows are (n, oh, ow) row-major -> back to NCHW (external API matches PyTorch).
    # TODO(synk): keep the block NHWC end-to-end in a full model to drop this transpose.
    out = out_p[:M, :Cout].reshape(N, OH, OW, Cout)
    return jnp.transpose(out, (0, 3, 1, 2))


# ----------------------------- pure-JAX reference -----------------------------

def cnn_block_reference(x_nchw, w_oihw, gamma, beta, stride):
    xp = jnp.pad(x_nchw, ((0, 0), (0, 0), (1, 1), (1, 1)), mode="reflect")
    y = jax.lax.conv_general_dilated(
        xp, w_oihw, (stride, stride), "VALID",
        dimension_numbers=("NCHW", "OIHW", "NCHW"),
    )
    m = y.mean(axis=(0, 2, 3), keepdims=True)
    v = y.var(axis=(0, 2, 3), keepdims=True)  # biased, as in PyTorch training BN
    z = (y - m) / jnp.sqrt(v + EPS)
    z = z * gamma.reshape(1, -1, 1, 1) + beta.reshape(1, -1, 1, 1)
    return jnp.where(z > 0, z, NEG_SLOPE * z)


if __name__ == "__main__":
    cnn_block = jax.jit(cnn_block_pallas, static_argnames="stride")

    key = jax.random.PRNGKey(0)
    configs = [
        dict(N=2, Cin=4, Cout=8, H=16, W=16, stride=2),
        dict(N=2, Cin=3, Cout=5, H=9, W=9, stride=1),   # exercises K/Cout padding path
    ]
    for cfg in configs:
        key, kx, kw, kg, kb = jax.random.split(key, 5)
        x = jax.random.normal(kx, (cfg["N"], cfg["Cin"], cfg["H"], cfg["W"]), jnp.float32)
        w = jax.random.normal(kw, (cfg["Cout"], cfg["Cin"], KH, KW), jnp.float32) * 0.1
        gamma = 1.0 + 0.1 * jax.random.normal(kg, (cfg["Cout"],), jnp.float32)
        beta = 0.1 * jax.random.normal(kb, (cfg["Cout"],), jnp.float32)

        out = cnn_block(x, w, gamma, beta, stride=cfg["stride"])
        out = jax.block_until_ready(out)
        ref = cnn_block_reference(x, w, gamma, beta, cfg["stride"])

        OH = (cfg["H"] + 2 - KH) // cfg["stride"] + 1
        OW = (cfg["W"] + 2 - KW) // cfg["stride"] + 1
        assert out.shape == (cfg["N"], cfg["Cout"], OH, OW), out.shape
        max_err = float(jnp.max(jnp.abs(out - ref)))
        # bf16 MXU inputs -> ~1e-2 level absolute error after normalization vs f32 ref.
        assert jnp.allclose(out, ref, rtol=2e-2, atol=2e-2), f"max abs err {max_err}"

    print("KERNEL_OK")
</pallas_src>

<mosaic_0001>
module attributes {stable_mosaic.version = 11 : i64} {
  func.func @bn_lrelu_kernel(%arg0: i32, %arg1: memref<128x128xf32, #tpu.memory_space<vmem>>, %arg2: memref<1x128xf32, #tpu.memory_space<vmem>>, %arg3: memref<1x128xf32, #tpu.memory_space<vmem>>, %arg4: memref<128x128xf32, #tpu.memory_space<vmem>>) attributes {dimension_semantics = [#tpu.dimension_semantics<parallel>], iteration_bounds = array<i64: 1>, scalar_prefetch = 0 : i64, scratch_operands = 0 : i64, tpu.core_type = #tpu.core_type<tc>, window_params = [{transform_indices = @transform_0, window_bounds = array<i64: 128, 128>}, {pipeline_mode = #tpu.pipeline_mode<synchronous>, transform_indices = @transform_1, window_bounds = array<i64: 1, 128>}, {pipeline_mode = #tpu.pipeline_mode<synchronous>, transform_indices = @transform_2, window_bounds = array<i64: 1, 128>}, {transform_indices = @transform_3, window_bounds = array<i64: 128, 128>}]} {
    %c0 = arith.constant 0 : index
    %c0_0 = arith.constant 0 : index
    %0 = vector.load %arg1[%c0, %c0_0] : memref<128x128xf32, #tpu.memory_space<vmem>>, vector<128x128xf32>
    %c0_1 = arith.constant 0 : index
    %c0_2 = arith.constant 0 : index
    %1 = vector.load %arg2[%c0_1, %c0_2] : memref<1x128xf32, #tpu.memory_space<vmem>>, vector<1x128xf32>
    %2 = vector.broadcast %1 : vector<1x128xf32> to vector<128x128xf32>
    %3 = arith.mulf %0, %2 : vector<128x128xf32>
    %c0_3 = arith.constant 0 : index
    %c0_4 = arith.constant 0 : index
    %4 = vector.load %arg3[%c0_3, %c0_4] : memref<1x128xf32, #tpu.memory_space<vmem>>, vector<1x128xf32>
    %5 = vector.broadcast %4 : vector<1x128xf32> to vector<128x128xf32>
    %6 = arith.addf %3, %5 : vector<128x128xf32>
    %cst = arith.constant 0.000000e+00 : f32
    %7 = vector.broadcast %cst : f32 to vector<128x128xf32>
    %8 = arith.cmpf ogt, %6, %7 : vector<128x128xf32>
    %cst_5 = arith.constant 2.000000e-01 : f32
    %9 = vector.broadcast %cst_5 : f32 to vector<128x128xf32>
    %10 = arith.mulf %9, %6 : vector<128x128xf32>
    %11 = arith.select %8, %6, %10 : vector<128x128xi1>, vector<128x128xf32>
    %c0_6 = arith.constant 0 : index
    %c0_7 = arith.constant 0 : index
    %12 = vector.load %arg4[%c0_6, %c0_7] : memref<128x128xf32, #tpu.memory_space<vmem>>, vector<128x128xf32>
    tpu.vector_store %arg4[%c0_6, %c0_7], %11 {strides = array<i32>} : memref<128x128xf32, #tpu.memory_space<vmem>>, vector<128x128xf32>,
    return
  }
  func.func @transform_0(%arg0: i32) -> (i32, i32) {
    %c0_i32 = arith.constant 0 : i32
    %c0_i32_0 = arith.constant 0 : i32
    return %arg0, %c0_i32 : i32, i32
  }
  func.func @transform_1(%arg0: i32) -> (i32, i32) {
    %c0_i32 = arith.constant 0 : i32
    %c0_i32_0 = arith.constant 0 : i32
    %c0_i32_1 = arith.constant 0 : i32
    return %c0_i32, %c0_i32_0 : i32, i32
  }
  func.func @transform_2(%arg0: i32) -> (i32, i32) {
    %c0_i32 = arith.constant 0 : i32
    %c0_i32_0 = arith.constant 0 : i32
    %c0_i32_1 = arith.constant 0 : i32
    return %c0_i32, %c0_i32_0 : i32, i32
  }
  func.func @transform_3(%arg0: i32) -> (i32, i32) {
    %c0_i32 = arith.constant 0 : i32
    %c0_i32_0 = arith.constant 0 : i32
    return %arg0, %c0_i32 : i32, i32
  }
}

module attributes {stable_mosaic.version = 11 : i64} {
  func.func @conv_stats_kernel(%arg0: i32, %arg1: i32, %arg2: memref<128x128xbf16, #tpu.memory_space<vmem>>, %arg3: memref<128x128xbf16, #tpu.memory_space<vmem>>, %arg4: memref<128x128xf32, #tpu.memory_space<vmem>>, %arg5: memref<8x128xf32, #tpu.memory_space<vmem>>) attributes {dimension_semantics = [#tpu.dimension_semantics<parallel>, #tpu.dimension_semantics<arbitrary>], iteration_bounds = array<i64: 1, 1>, scalar_prefetch = 0 : i64, scratch_operands = 0 : i64, tpu.core_type = #tpu.core_type<tc>, window_params = [{transform_indices = @transform_0, window_bounds = array<i64: 128, 128>}, {transform_indices = @transform_1, window_bounds = array<i64: 128, 128>}, {transform_indices = @transform_2, window_bounds = array<i64: 128, 128>}, {transform_indices = @transform_3, window_bounds = array<i64: 8, 128>}]} {
    %c0 = arith.constant 0 : index
    %c0_0 = arith.constant 0 : index
    %0 = vector.load %arg2[%c0, %c0_0] : memref<128x128xbf16, #tpu.memory_space<vmem>>, vector<128x128xbf16>
    %c0_1 = arith.constant 0 : index
    %c0_2 = arith.constant 0 : index
    %1 = vector.load %arg3[%c0_1, %c0_2] : memref<128x128xbf16, #tpu.memory_space<vmem>>, vector<128x128xbf16>
    %cst = arith.constant dense<0.000000e+00> : vector<128x128xf32>
    %2 = tpu.matmul %0, %1, %cst {dimension_numbers = #tpu.dot_dimension_numbers<[1], [0], [0], [1], [0, 0, 1, 1], [], []>} : vector<128x128xbf16>, vector<128x128xbf16>, vector<128x128xf32> -> vector<128x128xf32>
    %c0_i32 = arith.constant 0 : i32
    %3 = arith.cmpi eq, %arg1, %c0_i32 : i32
    %4 = arith.extui %3 : i1 to i32
    %c0_i32_3 = arith.constant 0 : i32
    %5 = arith.cmpi ne, %4, %c0_i32_3 : i32
    scf.if %5 {
      %c0_8 = arith.constant 0 : index
      %c0_9 = arith.constant 0 : index
      %12 = vector.load %arg4[%c0_8, %c0_9] : memref<128x128xf32, #tpu.memory_space<vmem>>, vector<128x128xf32>
      tpu.vector_store %arg4[%c0_8, %c0_9], %2 {strides = array<i32>} : memref<128x128xf32, #tpu.memory_space<vmem>>, vector<128x128xf32>,
    } else {
    }
    %c0_i32_4 = arith.constant 0 : i32
    %6 = arith.cmpi ne, %arg1, %c0_i32_4 : i32
    %7 = arith.extui %6 : i1 to i32
    %c0_i32_5 = arith.constant 0 : i32
    %8 = arith.cmpi ne, %7, %c0_i32_5 : i32
    scf.if %8 {
      %c0_8 = arith.constant 0 : index
      %c0_9 = arith.constant 0 : index
      %12 = vector.load %arg4[%c0_8, %c0_9] : memref<128x128xf32, #tpu.memory_space<vmem>>, vector<128x128xf32>
      %13 = arith.addf %12, %2 : vector<128x128xf32>
      %c0_10 = arith.constant 0 : index
      %c0_11 = arith.constant 0 : index
      %14 = vector.load %arg4[%c0_10, %c0_11] : memref<128x128xf32, #tpu.memory_space<vmem>>, vector<128x128xf32>
      tpu.vector_store %arg4[%c0_10, %c0_11], %13 {strides = array<i32>} : memref<128x128xf32, #tpu.memory_space<vmem>>, vector<128x128xf32>,
    } else {
    }
    %c0_i32_6 = arith.constant 0 : i32
    %9 = arith.cmpi eq, %arg1, %c0_i32_6 : i32
    %10 = arith.extui %9 : i1 to i32
    %c0_i32_7 = arith.constant 0 : i32
    %11 = arith.cmpi ne, %10, %c0_i32_7 : i32
    scf.if %11 {
      %c0_8 = arith.constant 0 : index
      %c0_9 = arith.constant 0 : index
      %12 = vector.load %arg4[%c0_8, %c0_9] : memref<128x128xf32, #tpu.memory_space<vmem>>, vector<128x128xf32>
      %cst_10 = arith.constant dense<0.000000e+00> : vector<128xf32>
      %13 = vector.multi_reduction <add>, %12, %cst_10 [0] : vector<128x128xf32> to vector<128xf32>
      %14 = vector.shape_cast %13 : vector<128xf32> to vector<1x128xf32>
      %15 = arith.mulf %12, %12 : vector<128x128xf32>
      %cst_11 = arith.constant dense<0.000000e+00> : vector<128xf32>
      %16 = vector.multi_reduction <add>, %15, %cst_11 [0] : vector<128x128xf32> to vector<128xf32>
      %17 = vector.shape_cast %16 : vector<128xf32> to vector<1x128xf32>
      %18 = tpu.iota {dimensions = array<i32: 0>} : vector<8x128xi32>
      %c0_i32_12 = arith.constant 0 : i32
      %19 = vector.broadcast %c0_i32_12 : i32 to vector<8x128xi32>
      %20 = arith.cmpi eq, %18, %19 : vector<8x128xi32>
      %c1_i32 = arith.constant 1 : i32
      %21 = vector.broadcast %c1_i32 : i32 to vector<8x128xi32>
      %22 = arith.cmpi eq, %18, %21 : vector<8x128xi32>
      %cst_13 = arith.constant 0.000000e+00 : f32
      %23 = vector.shape_cast %17 : vector<1x128xf32> to vector<1x128xf32>
      %24 = vector.broadcast %23 : vector<1x128xf32> to vector<8x128xf32>
      %25 = vector.broadcast %cst_13 : f32 to vector<8x128xf32>
      %26 = arith.select %22, %24, %25 : vector<8x128xi1>, vector<8x128xf32>
      %27 = vector.shape_cast %14 : vector<1x128xf32> to vector<1x128xf32>
      %28 = vector.broadcast %27 : vector<1x128xf32> to vector<8x128xf32>
      %29 = arith.select %20, %28, %26 : vector<8x128xi1>, vector<8x128xf32>
      %c0_14 = arith.constant 0 : index
      %c0_15 = arith.constant 0 : index
      %30 = vector.load %arg5[%c0_14, %c0_15] : memref<8x128xf32, #tpu.memory_space<vmem>>, vector<8x128xf32>
      tpu.vector_store %arg5[%c0_14, %c0_15], %29 {strides = array<i32>} : memref<8x128xf32, #tpu.memory_space<vmem>>, vector<8x128xf32>,
    } else {
    }
    return
  }
  func.func @transform_0(%arg0: i32, %arg1: i32) -> (i32, i32) {
    %c0_i32 = arith.constant 0 : i32
    return %arg0, %arg1 : i32, i32
  }
  func.func @transform_1(%arg0: i32, %arg1: i32) -> (i32, i32) {
    %c0_i32 = arith.constant 0 : i32
    %c0_i32_0 = arith.constant 0 : i32
    return %arg1, %c0_i32 : i32, i32
  }
  func.func @transform_2(%arg0: i32, %arg1: i32) -> (i32, i32) {
    %c0_i32 = arith.constant 0 : i32
    %c0_i32_0 = arith.constant 0 : i32
    return %arg0, %c0_i32 : i32, i32
  }
  func.func @transform_3(%arg0: i32, %arg1: i32) -> (i32, i32) {
    %c0_i32 = arith.constant 0 : i32
    %c0_i32_0 = arith.constant 0 : i32
    return %arg0, %c0_i32 : i32, i32
  }
}

</mosaic_0001>

<bundles_post_ra>
// kernel: cnn_block_pallas.3
= control target key start
LH: loop header
LB: loop body
LE: loop exit
PB: predicated region body
PF: predicated region fallthrough
CT: control target
= control target key end

     0   :  { %s305_s0 = inlined_call_operand.vmem [shape: f32[128,128], index: 0, kind: input, shape index: {}, may-alias: {0,3}]   ;;  %s306_s1 = inlined_call_operand.vmem [shape: f32[1,128], index: 1, kind: input, shape index: {}]   ;;  %s307_s2 = inlined_call_operand.vmem [shape: f32[1,128], index: 2, kind: input, shape index: {}]   ;;  %s308_s3 = inlined_call_operand.vmem [shape: f32[128,128], index: 3, kind: output, shape index: {}, may-alias: {0,3}]  }
   0x1   :  { %v14_v0 = vld [vmem:[%s305_s0] sm:$0xff]  ;;  %v15_v4 = vld [vmem:[%s305_s0 + $0x8] sm:$0xff]  ;;  %v16_v5 = vld [vmem:[%s305_s0 + $0x10] sm:$0xff] }
   0x2   :  { %v172_v1 = vld [vmem:[%s306_s1] ss:$0 sm:$0xff]  ;;  %v17_v6 = vld [vmem:[%s305_s0 + $0x18] sm:$0xff]  ;;  %v19_v11 = vld [vmem:[%s305_s0 + $0x28] sm:$0xff] }
   0x3   :  { %v177_v2 = vld [vmem:[%s307_s2] ss:$0 sm:$0xff]  ;;  %v37_v3 = vmul.f32 %v172_v1, %v14_v0  ;;  %v38_v7 = vmul.f32 %v172_v1, %v15_v4  ;;  %v39_v8 = vmul.f32 %v172_v1, %v16_v5  ;;  %v40_v9 = vmul.f32 %v172_v1, %v17_v6  ;;  %v20_v12 = vld [vmem:[%s305_s0 + $0x30] sm:$0xff]  ;;  %v21_v17 = vld [vmem:[%s305_s0 + $0x38] sm:$0xff] }
   0x4   :  { %v18_v10 = vld [vmem:[%s305_s0 + $0x20] sm:$0xff]  ;;  %v42_v15 = vmul.f32 %v172_v1, %v19_v11  ;;  %v43_v16 = vmul.f32 %v172_v1, %v20_v12  ;;  %v44_v21 = vmul.f32 %v172_v1, %v21_v17  ;;  %v23_v30 = vld [vmem:[%s305_s0 + $0x48] sm:$0xff]  ;;  %v24_v31 = vld [vmem:[%s305_s0 + $0x50] sm:$0xff] }
   0x5   :  { %v60_v13 = vadd.f32 %v177_v2, %v37_v3  ;;  %v41_v14 = vmul.f32 %v172_v1, %v18_v10  ;;  %v61_v18 = vadd.f32 %v177_v2, %v38_v7  ;;  %v62_v19 = vadd.f32 %v177_v2, %v39_v8  ;;  %v22_v25 = vld [vmem:[%s305_s0 + $0x40] sm:$0xff] }
   0x6   :  { %v63_v20 = vadd.f32 %v177_v2, %v40_v9  ;;  %v65_v24 = vadd.f32 %v177_v2, %v42_v15  ;;  %v66_v37 = vadd.f32 %v177_v2, %v43_v16  ;;  %v67_v38 = vadd.f32 %v177_v2, %v44_v21 }
   0x7   :  { %vm76_vm0 = vcmp.gt.f32.partialorder %v60_v13, 0.0  ;;  %v92_v22 = vmul.f32 0.2, %v60_v13  ;;  %v64_v23 = vadd.f32 %v177_v2, %v41_v14  ;;  %vm77_vm1 = vcmp.gt.f32.partialorder %v61_v18, 0.0 }
   0x8   :  { %v93_v26 = vmul.f32 0.2, %v61_v18  ;;  %vm78_vm2 = vcmp.gt.f32.partialorder %v62_v19, 0.0  ;;  %v94_v27 = vmul.f32 0.2, %v62_v19  ;;  %vm79_vm3 = vcmp.gt.f32.partialorder %v63_v20, 0.0 }
   0x9   :  { %v108_v28 = vsel %vm76_vm0, %v60_v13, %v92_v22  ;;  %v95_v29 = vmul.f32 0.2, %v63_v20  ;;  %vm80_vm4 = vcmp.gt.f32.partialorder %v64_v23, 0.0  ;;  %v96_v34 = vmul.f32 0.2, %v64_v23 }
   0xa   :  { %124 = vst [vmem:[%s308_s3] sm:$0xff] %v108_v28  ;;  %v109_v32 = vsel %vm77_vm1, %v61_v18, %v93_v26  ;;  %v110_v33 = vsel %vm78_vm2, %v62_v19, %v94_v27  ;;  %vm81_vm5 = vcmp.gt.f32.partialorder %v65_v24, 0.0  ;;  %v97_v36 = vmul.f32 0.2, %v65_v24 }
   0xb   :  { %125 = vst [vmem:[%s308_s3 + $0x8] sm:$0xff] %v109_v32  ;;  %126 = vst [vmem:[%s308_s3 + $0x10] sm:$0xff] %v110_v33  ;;  %v111_v35 = vsel %vm79_vm3, %v63_v20, %v95_v29  ;;  %v112_v39 = vsel %vm80_vm4, %v64_v23, %v96_v34  ;;  %v45_v40 = vmul.f32 %v172_v1, %v22_v25  ;;  %vm82_vm6 = vcmp.gt.f32.partialorder %v66_v37, 0.0 }
   0xc   :  { %127 = vst [vmem:[%s308_s3 + $0x18] sm:$0xff] %v111_v35  ;;  %v46_v41 = vmul.f32 %v172_v1, %v23_v30  ;;  %v47_v42 = vmul.f32 %v172_v1, %v24_v31  ;;  %v113_v46 = vsel %vm81_vm5, %v65_v24, %v97_v36  ;;  %v98_v47 = vmul.f32 0.2, %v66_v37 }
   0xd   :  { %vm83_vm7 = vcmp.gt.f32.partialorder %v67_v38, 0.0  ;;  %v99_v48 = vmul.f32 0.2, %v67_v38  ;;  %v68_v49 = vadd.f32 %v177_v2, %v45_v40 }
   0xe   :  { %v69_v50 = vadd.f32 %v177_v2, %v46_v41  ;;  %v70_v51 = vadd.f32 %v177_v2, %v47_v42  ;;  %v114_v52 = vsel %vm82_vm6, %v66_v37, %v98_v47 }
   0xf   :  { %v115_v57 = vsel %vm83_vm7, %v67_v38, %v99_v48  ;;  %vm84_vm8 = vcmp.gt.f32.partialorder %v68_v49, 0.0  ;;  %v100_v58 = vmul.f32 0.2, %v68_v49 }
  0x10   :  { %vm85_vm9 = vcmp.gt.f32.partialorder %v69_v50, 0.0  ;;  %v101_v59 = vmul.f32 0.2, %v69_v50  ;;  %vm86_vm10 = vcmp.gt.f32.partialorder %v70_v51, 0.0  ;;  %v102_v60 = vmul.f32 0.2, %v70_v51 }
  0x11   :  { %v116_v62 = vsel %vm84_vm8, %v68_v49, %v100_v58 }
  0x12   :  { %v117_v5 = vsel %vm85_vm9, %v69_v50, %v101_v59  ;;  %v118_v6 = vsel %vm86_vm10, %v70_v51, %v102_v60 }
  0x13   :  { %v25_v43 = vld [vmem:[%s305_s0 + $0x58] sm:$0xff]  ;;  %v26_v44 = vld [vmem:[%s305_s0 + $0x60] sm:$0xff]  ;;  %v27_v45 = vld [vmem:[%s305_s0 + $0x68] sm:$0xff] }
  0x14   :  { %128 = vst [vmem:[%s308_s3 + $0x20] sm:$0xff] %v112_v39  ;;  %129 = vst [vmem:[%s308_s3 + $0x28] sm:$0xff] %v113_v46  ;;  %v48_v53 = vmul.f32 %v172_v1, %v25_v43  ;;  %v49_v54 = vmul.f32 %v172_v1, %v26_v44  ;;  %v50_v55 = vmul.f32 %v172_v1, %v27_v45 }
  0x16   :  { %v71_v61 = vadd.f32 %v177_v2, %v48_v53  ;;  %v72_v63 = vadd.f32 %v177_v2, %v49_v54  ;;  %v73_v0 = vadd.f32 %v177_v2, %v50_v55 }
  0x18   :  { %vm87_vm11 = vcmp.gt.f32.partialorder %v71_v61, 0.0  ;;  %v103_v7 = vmul.f32 0.2, %v71_v61  ;;  %vm88_vm12 = vcmp.gt.f32.partialorder %v72_v63, 0.0  ;;  %v104_v8 = vmul.f32 0.2, %v72_v63 }
  0x19   :  { %vm89_vm13 = vcmp.gt.f32.partialorder %v73_v0, 0.0  ;;  %v105_v9 = vmul.f32 0.2, %v73_v0 }
  0x1a   :  { %v119_v10 = vsel %vm87_vm11, %v71_v61, %v103_v7  ;;  %v120_v13 = vsel %vm88_vm12, %v72_v63, %v104_v8 }
  0x1b   :  { %v28_v56 = vld [vmem:[%s305_s0 + $0x70] sm:$0xff]  ;;  %v121_v14 = vsel %vm89_vm13, %v73_v0, %v105_v9 }
  0x1c   :  { %130 = vst [vmem:[%s308_s3 + $0x30] sm:$0xff] %v114_v52  ;;  %131 = vst [vmem:[%s308_s3 + $0x38] sm:$0xff] %v115_v57  ;;  %v51_v3 = vmul.f32 %v172_v1, %v28_v56 }
  0x1e   :  { %v74_v11 = vadd.f32 %v177_v2, %v51_v3 }
  0x20   :  { %vm90_vm14 = vcmp.gt.f32.partialorder %v74_v11, 0.0  ;;  %v106_v15 = vmul.f32 0.2, %v74_v11 }
  0x22   :  { %v122_v17 = vsel %vm90_vm14, %v74_v11, %v106_v15 }
  0x23   :  { %v29_v4 = vld [vmem:[%s305_s0 + $0x78] sm:$0xff] }
  0x24   :  { %132 = vst [vmem:[%s308_s3 + $0x40] sm:$0xff] %v116_v62  ;;  %133 = vst [vmem:[%s308_s3 + $0x48] sm:$0xff] %v117_v5  ;;  %v52_v12 = vmul.f32 %v172_v1, %v29_v4 }
  0x25   :  { %134 = vst [vmem:[%s308_s3 + $0x50] sm:$0xff] %v118_v6  ;;  %135 = vst [vmem:[%s308_s3 + $0x58] sm:$0xff] %v119_v10 }
  0x26   :  { %136 = vst [vmem:[%s308_s3 + $0x60] sm:$0xff] %v120_v13  ;;  %137 = vst [vmem:[%s308_s3 + $0x68] sm:$0xff] %v121_v14  ;;  %v75_v16 = vadd.f32 %v177_v2, %v52_v12 }
  0x27   :  { %138 = vst [vmem:[%s308_s3 + $0x70] sm:$0xff] %v122_v17 }
  0x28   :  { %vm91_vm15 = vcmp.gt.f32.partialorder %v75_v16, 0.0  ;;  %v107_v1 = vmul.f32 0.2, %v75_v16 }
  0x2a   :  { %v123_v18 = vsel %vm91_vm15, %v75_v16, %v107_v1 }
  0x2b   :  { %139 = vst [vmem:[%s308_s3 + $0x78] sm:$0xff] %v123_v18 }

// kernel: cnn_block_pallas.2
= control target key start
LH: loop header
LB: loop body
LE: loop exit
PB: predicated region body
PF: predicated region fallthrough
CT: control target
= control target key end

     0   :  { %s618_s1 = inlined_call_operand.vmem [shape: bf16[128,128], index: 1, kind: input, shape index: {}]   ;;  %s619_s0 = inlined_call_operand.vmem [shape: bf16[128,128], index: 0, kind: input, shape index: {}]   ;;  %s620_s2 = inlined_call_operand.vmem [shape: f32[128,128], index: 2, kind: output, shape index: {0}]   ;;  %s621_s3 = inlined_call_operand.vmem [shape: f32[8,128], index: 3, kind: output, shape index: {1}]  }
   0x1   :  { %v483_v0 = vld [vmem:[%s618_s1 + $0x38] sm:$0xff]   ;;  %v484_v1 = vld [vmem:[%s618_s1 + $0x30] sm:$0xff]   ;;  %v485_v2 = vld [vmem:[%s618_s1 + $0x28] sm:$0xff]  }
   0x2   :  { %435 = vmatprep.subr.bf16.mxu0 %v483_v0  ;;  %467 = vmatprep.subr.bf16.mxu1 %v483_v0  ;;  %v486_v3 = vld [vmem:[%s618_s1 + $0x20] sm:$0xff]   ;;  %v487_v5 = vld [vmem:[%s618_s1 + $0x18] sm:$0xff]   ;;  %v488_v7 = vld [vmem:[%s618_s1 + $0x10] sm:$0xff]  }
   0x3   :  { %436 = vmatpush3.bf16.msra.mxu0 %v483_v0  ;;  %475 = vmatpush3.bf16.msra.mxu1 %v483_v0  ;;  %v491_v4 = vld [vmem:[%s619_s0] sm:$0xff]   ;;  %v489_v8 = vld [vmem:[%s618_s1 + $0x8] sm:$0xff]   ;;  %v493_v12 = vld [vmem:[%s619_s0 + $0x10] sm:$0xff]  }
   0x4   :  { %437 = vmatprep.subr.bf16.mxu0 %v484_v1  ;;  %468 = vmatprep.subr.bf16.mxu1 %v484_v1  ;;  %v495_v6 = vld [vmem:[%s619_s0 + $0x20] sm:$0xff]   ;;  %v492_v10 = vld [vmem:[%s619_s0 + $0x8] sm:$0xff]   ;;  %v497_v13 = vld [vmem:[%s619_s0 + $0x30] sm:$0xff]  }
   0x5   :  { %451 = vmatprep.mubr.bf16.mxu0 %v491_v4  ;;  %459 = vmatprep.mubr.bf16.mxu1 %v495_v6  ;;  %v490_v9 = vld [vmem:[%s618_s1] sm:$0xff]   ;;  %v496_v11 = vld [vmem:[%s619_s0 + $0x28] sm:$0xff]   ;;  %v494_v14 = vld [vmem:[%s619_s0 + $0x18] sm:$0xff]  }
   0x6   :  { %v498_v15 = vld [vmem:[%s619_s0 + $0x38] sm:$0xff]  }
   0x7   :  { %438 = vmatpush3.bf16.msra.mxu0 %v484_v1  ;;  %476 = vmatpush3.bf16.msra.mxu1 %v484_v1 }
   0x8   :  { %439 = vmatprep.subr.bf16.mxu0 %v485_v2  ;;  %469 = vmatprep.subr.bf16.mxu1 %v485_v2 }
   0xb   :  { %440 = vmatpush3.bf16.msra.mxu0 %v485_v2  ;;  %477 = vmatpush3.bf16.msra.mxu1 %v485_v2 }
   0xc   :  { %441 = vmatprep.subr.bf16.mxu0 %v486_v3  ;;  %470 = vmatprep.subr.bf16.mxu1 %v486_v3 }
   0xf   :  { %442 = vmatpush3.bf16.msra.mxu0 %v486_v3  ;;  %478 = vmatpush3.bf16.msra.mxu1 %v486_v3 }
  0x10   :  { %443 = vmatprep.subr.bf16.mxu0 %v487_v5  ;;  %471 = vmatprep.subr.bf16.mxu1 %v487_v5 }
  0x13   :  { %444 = vmatpush3.bf16.msra.mxu0 %v487_v5  ;;  %479 = vmatpush3.bf16.msra.mxu1 %v487_v5 }
  0x14   :  { %445 = vmatprep.subr.bf16.mxu0 %v488_v7  ;;  %472 = vmatprep.subr.bf16.mxu1 %v488_v7 }
  0x17   :  { %446 = vmatpush3.bf16.msra.mxu0 %v488_v7  ;;  %480 = vmatpush3.bf16.msra.mxu1 %v488_v7 }
  0x18   :  { %447 = vmatprep.subr.bf16.mxu0 %v489_v8  ;;  %473 = vmatprep.subr.bf16.mxu1 %v489_v8 }
  0x1b   :  { %448 = vmatpush3.bf16.msra.mxu0 %v489_v8  ;;  %481 = vmatpush3.bf16.msra.mxu1 %v489_v8 }
  0x1c   :  { %449 = vmatprep.subr.bf16.mxu0 %v490_v9  ;;  %474 = vmatprep.subr.bf16.mxu1 %v490_v9 }
  0x1f   :  { %450 = vmatpush3.bf16.msra.mxu0 %v490_v9  ;;  %482 = vmatpush3.bf16.msra.mxu1 %v490_v9 }
  0x22   :  { %452 = vmatmul.mubr.bf16.vlgmr.msra.gmra.mxu0 %v492_v10  ;;  %460 = vmatmul.mubr.bf16.vlgmr.msra.gmra.mxu1 %v496_v11 }
  0x23   :  { %455 = vmatprep.mubr.bf16.mxu0 %v493_v12  ;;  %463 = vmatprep.mubr.bf16.mxu1 %v497_v13 }
  0x2a   :  { %456 = vmatmul.mubr.bf16.gmra.mxu0 %v494_v14  ;;  %464 = vmatmul.mubr.bf16.gmra.mxu1 %v498_v15 }
  0xe2   :  { %v453_v16 = vpop.f32.mrf.mxu0  ;;  %v461_v17 = vpop.f32.mrf.mxu1 }
  0xe3   :  { %245 = vst [vmem:[%s620_s2 + $0x10] sm:$0xff] %v453_v16  ;;  %253 = vst [vmem:[%s620_s2 + $0x50] sm:$0xff] %v461_v17  ;;  %v353_v29 = vmul.f32 %v453_v16, %v453_v16  ;;  %v361_v59 = vmul.f32 %v461_v17, %v461_v17 }
  0xe4   :  { %v176_v18 = vpop.f32.mrf.mxu0  ;;  %v208_v19 = vpop.f32.mrf.mxu1 }
  0xe5   :  { %243 = vst [vmem:[%s620_s2] sm:$0xff] %v176_v18  ;;  %251 = vst [vmem:[%s620_s2 + $0x40] sm:$0xff] %v208_v19  ;;  %v351_v24 = vmul.f32 %v176_v18, %v176_v18  ;;  %v359_v53 = vmul.f32 %v208_v19, %v208_v19 }
  0xe6   :  { %v454_v20 = vpop.f32.mrf.mxu0  ;;  %v462_v21 = vpop.f32.mrf.mxu1 }
  0xe7   :  { %246 = vst [vmem:[%s620_s2 + $0x18] sm:$0xff] %v454_v20  ;;  %254 = vst [vmem:[%s620_s2 + $0x58] sm:$0xff] %v462_v21  ;;  %v354_v34 = vmul.f32 %v454_v20, %v454_v20  ;;  %v362_v62 = vmul.f32 %v462_v21, %v462_v21 }
  0xe8   :  { %v179_v22 = vpop.f32.mrf.mxu0  ;;  %v211_v23 = vpop.f32.mrf.mxu1 }
  0xe9   :  { %244 = vst [vmem:[%s620_s2 + $0x8] sm:$0xff] %v179_v22  ;;  %v330_v25 = vadd.f32 %v179_v22, %v176_v18  ;;  %v352_v26 = vmul.f32 %v179_v22, %v179_v22  ;;  %252 = vst [vmem:[%s620_s2 + $0x48] sm:$0xff] %v211_v23  ;;  %v360_v57 = vmul.f32 %v211_v23, %v211_v23 }
  0xea   :  { %v457_v27 = vpop.f32.mrf.mxu0  ;;  %v465_v28 = vpop.f32.mrf.mxu1 }
  0xeb   :  { %v331_v30 = vadd.f32 %v453_v16, %v330_v25  ;;  %v367_v31 = vadd.f32 %v352_v26, %v351_v24  ;;  %249 = vst [vmem:[%s620_s2 + $0x30] sm:$0xff] %v457_v27  ;;  %257 = vst [vmem:[%s620_s2 + $0x70] sm:$0xff] %v465_v28  ;;  %v357_v47 = vmul.f32 %v457_v27, %v457_v27 }
  0xec   :  { %v192_v32 = vpop.f32.mrf.mxu0  ;;  %v224_v33 = vpop.f32.mrf.mxu1  ;;  %v365_v7 = vmul.f32 %v465_v28, %v465_v28 }
  0xed   :  { %v368_v35 = vadd.f32 %v367_v31, %v353_v29  ;;  %247 = vst [vmem:[%s620_s2 + $0x20] sm:$0xff] %v192_v32  ;;  %v332_v36 = vadd.f32 %v454_v20, %v331_v30  ;;  %255 = vst [vmem:[%s620_s2 + $0x60] sm:$0xff] %v224_v33  ;;  %v355_v40 = vmul.f32 %v192_v32, %v192_v32 }
  0xee   :  { %v458_v37 = vpop.f32.mrf.mxu0  ;;  %v466_v38 = vpop.f32.mrf.mxu1  ;;  %v363_v2 = vmul.f32 %v224_v33, %v224_v33 }
  0xef   :  { %v333_v39 = vadd.f32 %v332_v36, %v192_v32  ;;  %v369_v41 = vadd.f32 %v368_v35, %v354_v34  ;;  %250 = vst [vmem:[%s620_s2 + $0x38] sm:$0xff] %v458_v37  ;;  %258 = vst [vmem:[%s620_s2 + $0x78] sm:$0xff] %v466_v38  ;;  %v358_v50 = vmul.f32 %v458_v37, %v458_v37 }
  0xf0   :  { %v195_v42 = vpop.f32.mrf.mxu0  ;;  %v227_v43 = vpop.f32.mrf.mxu1  ;;  %v366_v10 = vmul.f32 %v466_v38, %v466_v38 }
  0xf1   :  { %v370_v44 = vadd.f32 %v369_v41, %v355_v40  ;;  %248 = vst [vmem:[%s620_s2 + $0x28] sm:$0xff] %v195_v42  ;;  %v334_v45 = vadd.f32 %v333_v39, %v195_v42  ;;  %v356_v46 = vmul.f32 %v195_v42, %v195_v42  ;;  %256 = vst [vmem:[%s620_s2 + $0x68] sm:$0xff] %v227_v43 }
  0xf2   :  { %v364_v6 = vmul.f32 %v227_v43, %v227_v43 }
  0xf3   :  { %v335_v48 = vadd.f32 %v457_v27, %v334_v45  ;;  %v371_v49 = vadd.f32 %v370_v44, %v356_v46 }
  0xf5   :  { %v372_v51 = vadd.f32 %v371_v49, %v357_v47  ;;  %v336_v52 = vadd.f32 %v458_v37, %v335_v48 }
  0xf7   :  { %v337_v54 = vadd.f32 %v336_v52, %v208_v19  ;;  %v373_v55 = vadd.f32 %v372_v51, %v358_v50 }
  0xf9   :  { %v338_v56 = vadd.f32 %v337_v54, %v211_v23  ;;  %v374_v58 = vadd.f32 %v373_v55, %v359_v53 }
  0xfb   :  { %v339_v60 = vadd.f32 %v461_v17, %v338_v56  ;;  %v375_v61 = vadd.f32 %v374_v58, %v360_v57  ;;  %v388_v17 = vlaneseq }
  0xfd   :  { %v376_v63 = vadd.f32 %v375_v61, %v361_v59  ;;  %v340_v0 = vadd.f32 %v462_v21, %v339_v60  ;;  %v389_v22 = vshrl.u32 %v388_v17, 7 }
  0xff   :  { %v341_v1 = vadd.f32 %v340_v0, %v224_v33  ;;  %v377_v3 = vadd.f32 %v376_v63, %v362_v62  ;;  %vm391_vm0 = vcmp.eq.s32.totalorder %v389_v22, 1  ;;  %vm390_vm1 = vcmp.eq.s32.totalorder %v389_v22, 0 }
 0x101   :  { %v378_v4 = vadd.f32 %v377_v3, %v363_v2  ;;  %v342_v5 = vadd.f32 %v341_v1, %v227_v43 }
 0x103   :  { %v343_v8 = vadd.f32 %v465_v28, %v342_v5  ;;  %v379_v9 = vadd.f32 %v378_v4, %v364_v6 }
 0x105   :  { %v344_v11 = vadd.f32 %v466_v38, %v343_v8  ;;  %v380_v12 = vadd.f32 %v379_v9, %v365_v7 }
 0x107   :  { %v345_v13 = vrot.slane %v344_v11, 4  ;;  %v381_v14 = vadd.f32 %v380_v12, %v366_v10 }
 0x109   :  { %v346_v15 = vadd.f32 %v345_v13, %v344_v11  ;;  %v382_v16 = vrot.slane %v381_v14, 4 }
 0x10b   :  { %v347_v18 = vrot.slane %v346_v15, 2  ;;  %v383_v19 = vadd.f32 %v382_v16, %v381_v14 }
 0x10d   :  { %v348_v20 = vadd.f32 %v347_v18, %v346_v15  ;;  %v384_v21 = vrot.slane %v383_v19, 2 }
 0x10f   :  { %v385_v23 = vadd.f32 %v384_v21, %v383_v19  ;;  %v349_v24 = vrot.slane %v348_v20, 1 }
 0x111   :  { %v386_v25 = vrot.slane %v385_v23, 1  ;;  %v350_v27 = vadd.f32 %v349_v24, %v348_v20 }
 0x113   :  { %v387_v26 = vadd.f32 %v386_v25, %v385_v23 }
 0x115   :  { %v392_v28 = vsel %vm391_vm0, %v387_v26, 0.0 }
 0x116   :  { %v393_v29 = vsel %vm390_vm1, %v350_v27, %v392_v28 }
 0x117   :  { %394 = vst [vmem:[%s621_s3] sm:$0xff] %v393_v29 }

</bundles_post_ra>
